<compile_context>
chip_gen: v7x
topology: tpu7x:2x2x1
jax: 0.10.0
libtpu: 0.0.40
codegen_flags: <defaults>
</compile_context>

<pallas_src>
from functools import partial

import jax
import jax.numpy as jnp
from jax import lax
from jax.experimental import pallas as pl
from jax.experimental.pallas import tpu as pltpu

ALPHA = 10.0
GAMMA = 2.0
LANES = 128
SUBLANES = 8
ROW_ALIGN = SUBLANES * LANES        # pad n only up to a multiple of 1024
TARGET_BLOCK_ROWS = 2048            # 1 MiB f32 per input tile per grid step
PAD_X = -10000.0                    # sentinel logit: contributes exactly 0


def _round_up(a, b):
    return -(-a // b) * b


def _default_num_splits():
    """2 only on chips with 2 TensorCores (v7x); 1 on v5e/v6e or if unknown."""
    try:
        info = pltpu.get_tpu_info()
        for attr in ("num_tensorcores", "tensorcore_count", "num_cores"):
            v = getattr(info, attr, None)
            if isinstance(v, int) and v > 0:
                return min(int(v), 2)
    except Exception:
        pass
    return 1


def _mixed_loss_partials_kernel(x_ref, t_ref, out_ref, acc_f, acc_i, acc_d, *,
                                gamma, rows_valid, block_rows, blocks_per_split,
                                first_masked_block, needs_row_mask,
                                binary_target):
    c = pl.program_id(0)
    j = pl.program_id(1)
    nj = pl.num_programs(1)

    @pl.when(j == 0)
    def _():
        acc_f[...] = jnp.zeros_like(acc_f)
        acc_i[...] = jnp.zeros_like(acc_i)
        acc_d[...] = jnp.zeros_like(acc_d)

    x = x_ref[...].astype(jnp.float32)
    t = t_ref[...].astype(jnp.float32)

    # Shared transcendentals: e = exp(-|x|) feeds BCE's log1p and sigmoid(x).
    e = jnp.exp(-jnp.abs(x))
    one_pe = 1.0 + e
    log1pe = jnp.log(one_pe)
    r = 1.0 / one_pe
    er = e * r
    x_nonneg = x >= 0.0
    sig = jnp.where(x_nonneg, r, er)            # sigmoid(x)

    # Stable BCE-with-logits == relu(x) - x*t + log(1 + exp(-|x|)); reuse x*t.
    xt = x * t
    bce = jnp.maximum(x, 0.0) - xt + log1pe

    # Focal modulation  exp(gamma * logsigmoid(z)),  z = -x*(2t-1) = x - 2*x*t
    if float(gamma) == 2.0 and binary_target:
        # t in {0,1}:  sigmoid(z) = sigmoid(x) if t==0 else sigmoid(-x);
        # both branches (r, e*r) are already computed -> no extra EUP ops.
        swap = jnp.logical_xor(x_nonneg, t > 0.5)
        sig_z = jnp.where(swap, r, er)
        mod = sig_z * sig_z                     # == exp(2 * logsigmoid(z))
    elif float(gamma) == 2.0:
        z = x - 2.0 * xt
        ez = jnp.exp(-jnp.abs(z))
        rz = 1.0 / (1.0 + ez)
        sig_z = jnp.where(z >= 0.0, rz, ez * rz)
        mod = sig_z * sig_z                     # exact for any target
    else:
        z = x - 2.0 * xt
        logsig = jnp.minimum(z, 0.0) - jnp.log(1.0 + jnp.exp(-jnp.abs(z)))
        mod = jnp.exp(logsig * gamma)

    focal = mod * bce
    inter = sig * t
    denom = sig + t

    def reduce_and_add(f, i, d):
        # Reduce the block to one vreg (8,128) with per-lane VPU adds only,
        # then a single accumulator read-modify-write per quantity.
        acc_f[...] += f.reshape(-1, SUBLANES, LANES).sum(axis=0)
        acc_i[...] += i.reshape(-1, SUBLANES, LANES).sum(axis=0)
        acc_d[...] += d.reshape(-1, SUBLANES, LANES).sum(axis=0)

    if needs_row_mask:
        blk = c * blocks_per_split + j

        @pl.when(blk < first_masked_block)      # full blocks: no mask cost
        def _():
            reduce_and_add(focal, inter, denom)

        @pl.when(blk >= first_masked_block)     # partial / overflow blocks
        def _():
            rid = lax.broadcasted_iota(jnp.int32, (block_rows, LANES), 0)
            valid = (blk * block_rows + rid) < rows_valid   # row compare: no overflow
            reduce_and_add(jnp.where(valid, focal, 0.0),
                           jnp.where(valid, inter, 0.0),
                           jnp.where(valid, denom, 0.0))
    else:
        reduce_and_add(focal, inter, denom)

    # Single cross-lane reduce + SMEM write per split.
    @pl.when(j == nj - 1)
    def _():
        out_ref[0, 0] = jnp.sum(acc_f[...])
        out_ref[0, 1] = jnp.sum(acc_i[...])
        out_ref[0, 2] = jnp.sum(acc_d[...])


def mixed_loss(x, t, *, alpha=ALPHA, gamma=GAMMA, binary_target=True,
               num_splits=None):
    """alpha * FocalLoss(gamma)(x, t) - log(dice_loss(x, t)).

    `binary_target=True` enables an exact fast path for targets in {0, 1}
    (the usual segmentation-mask case); pass False for arbitrary soft targets.
    """
    if x.shape != t.shape:
        raise ValueError(
            f"Target size ({t.shape}) must be the same as input size ({x.shape})")
    n = x.size
    xf = x.reshape(-1)   # native dtype kept; kernel upcasts to f32
    tf = t.reshape(-1)

    # Pad only to the next multiple of 1024 elements (8 sublanes x 128 lanes).
    # Common NN sizes hit the pad-free path (free reshape).  Sentinel values
    # contribute exactly zero, so no masking is needed for this tail.
    padded_n = _round_up(max(n, 1), ROW_ALIGN)
    pad = padded_n - n
    if pad:
        xf = jnp.pad(xf, (0, pad), constant_values=PAD_X)
        tf = jnp.pad(tf, (0, pad), constant_values=0)
    rows = padded_n // LANES                       # always a multiple of 8

    # Block = whole array when small (always tile-legal: equals full dims),
    # otherwise a 2048-row (1 MiB f32) tile; a partial last block is masked
    # inside the kernel (gated with pl.when so only that block pays).
    block_rows = rows if rows <= TARGET_BLOCK_ROWS else TARGET_BLOCK_ROWS
    num_blocks = -(-rows // block_rows)

    if num_splits is None:
        num_splits = _default_num_splits()
    num_splits = max(1, min(int(num_splits), num_blocks))
    blocks_per_split = -(-num_blocks // num_splits)
    num_grid_blocks = num_splits * blocks_per_split
    grid = (num_splits, blocks_per_split)

    needs_row_mask = num_grid_blocks * block_rows > rows
    first_masked_block = rows // block_rows

    x2 = xf.reshape(rows, LANES)
    t2 = tf.reshape(rows, LANES)

    if num_grid_blocks > num_blocks:
        # Uneven split: overflow grid steps re-read the last valid block
        # (in-bounds DMA) and their contribution is zeroed by the row mask.
        def in_index_map(c, j):
            return (jnp.minimum(c * blocks_per_split + j, num_blocks - 1), 0)
    else:
        def in_index_map(c, j):
            return (c * blocks_per_split + j, 0)

    kernel = partial(
        _mixed_loss_partials_kernel,
        gamma=float(gamma),
        rows_valid=rows,
        block_rows=block_rows,
        blocks_per_split=blocks_per_split,
        first_masked_block=first_masked_block,
        needs_row_mask=needs_row_mask,
        binary_target=bool(binary_target),
    )

    partials = pl.pallas_call(
        kernel,
        out_shape=jax.ShapeDtypeStruct((num_splits, 3), jnp.float32),
        grid_spec=pltpu.PrefetchScalarGridSpec(
            num_scalar_prefetch=0,
            grid=grid,
            in_specs=[
                pl.BlockSpec((block_rows, LANES), in_index_map),
                pl.BlockSpec((block_rows, LANES), in_index_map),
            ],
            out_specs=pl.BlockSpec((1, 3), lambda c, j: (c, 0),
                                   memory_space=pltpu.MemorySpace.SMEM),
            scratch_shapes=[pltpu.VMEM((SUBLANES, LANES), jnp.float32)] * 3,
        ),
        compiler_params=pltpu.CompilerParams(
            dimension_semantics=("parallel", "arbitrary")),
    )(x2, t2)

    focal_sum = jnp.sum(partials[:, 0])
    intersection = jnp.sum(partials[:, 1])
    denom = jnp.sum(partials[:, 2])

    focal_mean = focal_sum / jnp.float32(n)
    smooth = 1.0
    dice = (2.0 * intersection + smooth) / (denom + smooth)
    loss = alpha * focal_mean - jnp.log(dice)
    return loss  # scalar; .mean() of a scalar is the identity


def _mixed_loss_ref(x, t, *, alpha=ALPHA, gamma=GAMMA):
    # Pure-JAX reference matching the PyTorch module exactly.
    x = x.astype(jnp.float32).reshape(-1)
    t = t.astype(jnp.float32).reshape(-1)
    max_val = jnp.maximum(-x, 0.0)
    bce = x - x * t + max_val + jnp.log(jnp.exp(-max_val) + jnp.exp(-x - max_val))
    logsig = jax.nn.log_sigmoid(-x * (t * 2.0 - 1.0))
    focal = jnp.mean(jnp.exp(logsig * gamma) * bce)
    sig = jax.nn.sigmoid(x)
    dice = (2.0 * jnp.sum(sig * t) + 1.0) / (jnp.sum(sig) + jnp.sum(t) + 1.0)
    return alpha * focal - jnp.log(dice)


if __name__ == "__main__":
    key = jax.random.PRNGKey(0)
    k1, k2 = jax.random.split(key)

    # NCHW logits and binary target mask (n = 2048 -> pad-free fast path)
    x = jax.random.normal(k1, (2, 4, 16, 16), dtype=jnp.float32) * 2.0
    t = (jax.random.uniform(k2, (2, 4, 16, 16)) > 0.5).astype(jnp.float32)
    out = jax.block_until_ready(mixed_loss(x, t))
    ref = jax.block_until_ready(_mixed_loss_ref(x, t))
    assert jnp.allclose(out, ref, rtol=1e-5, atol=1e-5), (out, ref)

    # Odd-sized input: exercises the sentinel-padded tail path.
    k3, k4 = jax.random.split(k1)
    x2 = jax.random.normal(k3, (3, 5, 7, 11), dtype=jnp.float32) * 2.0
    t2 = (jax.random.uniform(k4, (3, 5, 7, 11)) > 0.5).astype(jnp.float32)
    out2 = jax.block_until_ready(mixed_loss(x2, t2))
    ref2 = jax.block_until_ready(_mixed_loss_ref(x2, t2))
    assert jnp.allclose(out2, ref2, rtol=1e-5, atol=1e-5), (out2, ref2)

    print("KERNEL_OK")
</pallas_src>

<mosaic_0001>
module attributes {stable_mosaic.version = 11 : i64} {
  func.func @_mixed_loss_partials_kernel(%arg0: i32, %arg1: i32, %arg2: memref<16x128xf32, #tpu.memory_space<vmem>>, %arg3: memref<16x128xf32, #tpu.memory_space<vmem>>, %arg4: memref<1x3xf32, #tpu.memory_space<smem>>, %arg5: memref<8x128xf32, #tpu.memory_space<vmem>>, %arg6: memref<8x128xf32, #tpu.memory_space<vmem>>, %arg7: memref<8x128xf32, #tpu.memory_space<vmem>>) attributes {dimension_semantics = [#tpu.dimension_semantics<parallel>, #tpu.dimension_semantics<arbitrary>], iteration_bounds = array<i64: 1, 1>, scalar_prefetch = 0 : i64, scratch_operands = 3 : i64, tpu.core_type = #tpu.core_type<tc>, window_params = [{transform_indices = @transform_0, window_bounds = array<i64: 16, 128>}, {transform_indices = @transform_1, window_bounds = array<i64: 16, 128>}, {transform_indices = @transform_2, window_bounds = array<i64: 1, 3>}]} {
    %c0_i32 = arith.constant 0 : i32
    %0 = arith.cmpi eq, %arg1, %c0_i32 : i32
    %1 = arith.extui %0 : i1 to i32
    %c0_i32_0 = arith.constant 0 : i32
    %2 = arith.cmpi ne, %1, %c0_i32_0 : i32
    scf.if %2 {
      %cst_26 = arith.constant 0.000000e+00 : f32
      %49 = vector.broadcast %cst_26 : f32 to vector<8x128xf32>
      %c0_27 = arith.constant 0 : index
      %c0_28 = arith.constant 0 : index
      %50 = vector.load %arg5[%c0_27, %c0_28] : memref<8x128xf32, #tpu.memory_space<vmem>>, vector<8x128xf32>
      tpu.vector_store %arg5[%c0_27, %c0_28], %49 {strides = array<i32>} : memref<8x128xf32, #tpu.memory_space<vmem>>, vector<8x128xf32>,
      %cst_29 = arith.constant 0.000000e+00 : f32
      %51 = vector.broadcast %cst_29 : f32 to vector<8x128xf32>
      %c0_30 = arith.constant 0 : index
      %c0_31 = arith.constant 0 : index
      %52 = vector.load %arg6[%c0_30, %c0_31] : memref<8x128xf32, #tpu.memory_space<vmem>>, vector<8x128xf32>
      tpu.vector_store %arg6[%c0_30, %c0_31], %51 {strides = array<i32>} : memref<8x128xf32, #tpu.memory_space<vmem>>, vector<8x128xf32>,
      %cst_32 = arith.constant 0.000000e+00 : f32
      %53 = vector.broadcast %cst_32 : f32 to vector<8x128xf32>
      %c0_33 = arith.constant 0 : index
      %c0_34 = arith.constant 0 : index
      %54 = vector.load %arg7[%c0_33, %c0_34] : memref<8x128xf32, #tpu.memory_space<vmem>>, vector<8x128xf32>
      tpu.vector_store %arg7[%c0_33, %c0_34], %53 {strides = array<i32>} : memref<8x128xf32, #tpu.memory_space<vmem>>, vector<8x128xf32>,
    } else {
    }
    %c0 = arith.constant 0 : index
    %c0_1 = arith.constant 0 : index
    %3 = vector.load %arg2[%c0, %c0_1] : memref<16x128xf32, #tpu.memory_space<vmem>>, vector<16x128xf32>
    %c0_2 = arith.constant 0 : index
    %c0_3 = arith.constant 0 : index
    %4 = vector.load %arg3[%c0_2, %c0_3] : memref<16x128xf32, #tpu.memory_space<vmem>>, vector<16x128xf32>
    %5 = math.absf %3 : vector<16x128xf32>
    %cst = arith.constant 0.000000e+00 : f32
    %6 = vector.broadcast %cst : f32 to vector<16x128xf32>
    %7 = arith.subf %6, %5 : vector<16x128xf32>
    %8 = math.exp %7 : vector<16x128xf32>
    %cst_4 = arith.constant 1.000000e+00 : f32
    %9 = vector.broadcast %cst_4 : f32 to vector<16x128xf32>
    %10 = arith.addf %9, %8 : vector<16x128xf32>
    %11 = math.log %10 : vector<16x128xf32>
    %cst_5 = arith.constant 1.000000e+00 : f32
    %12 = vector.broadcast %cst_5 : f32 to vector<16x128xf32>
    %13 = arith.divf %12, %10 : vector<16x128xf32>
    %14 = arith.mulf %8, %13 : vector<16x128xf32>
    %cst_6 = arith.constant 0.000000e+00 : f32
    %15 = vector.broadcast %cst_6 : f32 to vector<16x128xf32>
    %16 = arith.cmpf oge, %3, %15 : vector<16x128xf32>
    %17 = arith.select %16, %13, %14 : vector<16x128xi1>, vector<16x128xf32>
    %18 = arith.mulf %3, %4 : vector<16x128xf32>
    %cst_7 = arith.constant 0.000000e+00 : f32
    %19 = vector.broadcast %cst_7 : f32 to vector<16x128xf32>
    %20 = arith.maximumf %3, %19 : vector<16x128xf32>
    %21 = arith.subf %20, %18 : vector<16x128xf32>
    %22 = arith.addf %21, %11 : vector<16x128xf32>
    %cst_8 = arith.constant 5.000000e-01 : f32
    %23 = vector.broadcast %cst_8 : f32 to vector<16x128xf32>
    %24 = arith.cmpf ogt, %4, %23 : vector<16x128xf32>
    %25 = arith.xori %16, %24 : vector<16x128xi1>
    %26 = arith.select %25, %13, %14 : vector<16x128xi1>, vector<16x128xf32>
    %27 = arith.mulf %26, %26 : vector<16x128xf32>
    %28 = arith.mulf %27, %22 : vector<16x128xf32>
    %29 = arith.mulf %17, %4 : vector<16x128xf32>
    %30 = arith.addf %17, %4 : vector<16x128xf32>
    %c0_9 = arith.constant 0 : index
    %c0_10 = arith.constant 0 : index
    %31 = vector.load %arg5[%c0_9, %c0_10] : memref<8x128xf32, #tpu.memory_space<vmem>>, vector<8x128xf32>
    %32 = vector.shape_cast %28 : vector<16x128xf32> to vector<2x8x128xf32>
    %cst_11 = arith.constant dense<0.000000e+00> : vector<8x128xf32>
    %33 = vector.multi_reduction <add>, %32, %cst_11 [0] : vector<2x8x128xf32> to vector<8x128xf32>
    %34 = arith.addf %31, %33 : vector<8x128xf32>
    %c0_12 = arith.constant 0 : index
    %c0_13 = arith.constant 0 : index
    %35 = vector.load %arg5[%c0_12, %c0_13] : memref<8x128xf32, #tpu.memory_space<vmem>>, vector<8x128xf32>
    tpu.vector_store %arg5[%c0_12, %c0_13], %34 {strides = array<i32>} : memref<8x128xf32, #tpu.memory_space<vmem>>, vector<8x128xf32>,
    %c0_14 = arith.constant 0 : index
    %c0_15 = arith.constant 0 : index
    %36 = vector.load %arg6[%c0_14, %c0_15] : memref<8x128xf32, #tpu.memory_space<vmem>>, vector<8x128xf32>
    %37 = vector.shape_cast %29 : vector<16x128xf32> to vector<2x8x128xf32>
    %cst_16 = arith.constant dense<0.000000e+00> : vector<8x128xf32>
    %38 = vector.multi_reduction <add>, %37, %cst_16 [0] : vector<2x8x128xf32> to vector<8x128xf32>
    %39 = arith.addf %36, %38 : vector<8x128xf32>
    %c0_17 = arith.constant 0 : index
    %c0_18 = arith.constant 0 : index
    %40 = vector.load %arg6[%c0_17, %c0_18] : memref<8x128xf32, #tpu.memory_space<vmem>>, vector<8x128xf32>
    tpu.vector_store %arg6[%c0_17, %c0_18], %39 {strides = array<i32>} : memref<8x128xf32, #tpu.memory_space<vmem>>, vector<8x128xf32>,
    %c0_19 = arith.constant 0 : index
    %c0_20 = arith.constant 0 : index
    %41 = vector.load %arg7[%c0_19, %c0_20] : memref<8x128xf32, #tpu.memory_space<vmem>>, vector<8x128xf32>
    %42 = vector.shape_cast %30 : vector<16x128xf32> to vector<2x8x128xf32>
    %cst_21 = arith.constant dense<0.000000e+00> : vector<8x128xf32>
    %43 = vector.multi_reduction <add>, %42, %cst_21 [0] : vector<2x8x128xf32> to vector<8x128xf32>
    %44 = arith.addf %41, %43 : vector<8x128xf32>
    %c0_22 = arith.constant 0 : index
    %c0_23 = arith.constant 0 : index
    %45 = vector.load %arg7[%c0_22, %c0_23] : memref<8x128xf32, #tpu.memory_space<vmem>>, vector<8x128xf32>
    tpu.vector_store %arg7[%c0_22, %c0_23], %44 {strides = array<i32>} : memref<8x128xf32, #tpu.memory_space<vmem>>, vector<8x128xf32>,
    %c0_i32_24 = arith.constant 0 : i32
    %46 = arith.cmpi eq, %arg1, %c0_i32_24 : i32
    %47 = arith.extui %46 : i1 to i32
    %c0_i32_25 = arith.constant 0 : i32
    %48 = arith.cmpi ne, %47, %c0_i32_25 : i32
    scf.if %48 {
      %c0_26 = arith.constant 0 : index
      %c0_27 = arith.constant 0 : index
      %49 = vector.load %arg5[%c0_26, %c0_27] : memref<8x128xf32, #tpu.memory_space<vmem>>, vector<8x128xf32>
      %50 = vector.shape_cast %49 : vector<8x128xf32> to vector<1x8x128xf32>
      %cst_28 = arith.constant dense<0.000000e+00> : vector<1xf32>
      %51 = vector.multi_reduction <add>, %50, %cst_28 [1, 2] : vector<1x8x128xf32> to vector<1xf32>
      %52 = vector.shape_cast %51 : vector<1xf32> to vector<1x1x1xf32>
      %53 = vector.extract %52[0, 0, 0] : f32 from vector<1x1x1xf32>
      %c0_29 = arith.constant 0 : index
      %c0_30 = arith.constant 0 : index
      %54 = memref.load %arg4[%c0_29, %c0_30] : memref<1x3xf32, #tpu.memory_space<smem>>
      memref.store %53, %arg4[%c0_29, %c0_30] : memref<1x3xf32, #tpu.memory_space<smem>>
      %c0_31 = arith.constant 0 : index
      %c0_32 = arith.constant 0 : index
      %55 = vector.load %arg6[%c0_31, %c0_32] : memref<8x128xf32, #tpu.memory_space<vmem>>, vector<8x128xf32>
      %56 = vector.shape_cast %55 : vector<8x128xf32> to vector<1x8x128xf32>
      %cst_33 = arith.constant dense<0.000000e+00> : vector<1xf32>
      %57 = vector.multi_reduction <add>, %56, %cst_33 [1, 2] : vector<1x8x128xf32> to vector<1xf32>
      %58 = vector.shape_cast %57 : vector<1xf32> to vector<1x1x1xf32>
      %59 = vector.extract %58[0, 0, 0] : f32 from vector<1x1x1xf32>
      %c0_34 = arith.constant 0 : index
      %c1 = arith.constant 1 : index
      %60 = memref.load %arg4[%c0_34, %c1] : memref<1x3xf32, #tpu.memory_space<smem>>
      memref.store %59, %arg4[%c0_34, %c1] : memref<1x3xf32, #tpu.memory_space<smem>>
      %c0_35 = arith.constant 0 : index
      %c0_36 = arith.constant 0 : index
      %61 = vector.load %arg7[%c0_35, %c0_36] : memref<8x128xf32, #tpu.memory_space<vmem>>, vector<8x128xf32>
      %62 = vector.shape_cast %61 : vector<8x128xf32> to vector<1x8x128xf32>
      %cst_37 = arith.constant dense<0.000000e+00> : vector<1xf32>
      %63 = vector.multi_reduction <add>, %62, %cst_37 [1, 2] : vector<1x8x128xf32> to vector<1xf32>
      %64 = vector.shape_cast %63 : vector<1xf32> to vector<1x1x1xf32>
      %65 = vector.extract %64[0, 0, 0] : f32 from vector<1x1x1xf32>
      %c0_38 = arith.constant 0 : index
      %c2 = arith.constant 2 : index
      %66 = memref.load %arg4[%c0_38, %c2] : memref<1x3xf32, #tpu.memory_space<smem>>
      memref.store %65, %arg4[%c0_38, %c2] : memref<1x3xf32, #tpu.memory_space<smem>>
    } else {
    }
    return
  }
  func.func @transform_0(%arg0: i32, %arg1: i32) -> (i32, i32) {
    %c1_i32 = arith.constant 1 : i32
    %0 = arith.muli %arg0, %c1_i32 : i32
    %1 = arith.addi %0, %arg1 : i32
    %c0_i32 = arith.constant 0 : i32
    %c0_i32_0 = arith.constant 0 : i32
    return %1, %c0_i32 : i32, i32
  }
  func.func @transform_1(%arg0: i32, %arg1: i32) -> (i32, i32) {
    %c1_i32 = arith.constant 1 : i32
    %0 = arith.muli %arg0, %c1_i32 : i32
    %1 = arith.addi %0, %arg1 : i32
    %c0_i32 = arith.constant 0 : i32
    %c0_i32_0 = arith.constant 0 : i32
    return %1, %c0_i32 : i32, i32
  }
  func.func @transform_2(%arg0: i32, %arg1: i32) -> (i32, i32) {
    %c0_i32 = arith.constant 0 : i32
    %c0_i32_0 = arith.constant 0 : i32
    return %arg0, %c0_i32 : i32, i32
  }
}

</mosaic_0001>

<bundles_post_ra>
// kernel: tpu_custom_call.1
= control target key start
LH: loop header
LB: loop body
LE: loop exit
PB: predicated region body
PF: predicated region fallthrough
CT: control target
= control target key end

     0   :  { %7 = vsyncpa [#allocation6], 0  ;;  %s318_s0 = inlined_call_operand.hbm [shape: f32[16,128], index: 0, kind: input, shape index: {}]   ;;  %s319_s1 = inlined_call_operand.hbm [shape: f32[16,128], index: 1, kind: input, shape index: {}]   ;;  %s320_s2 = inlined_call_operand.hbm [shape: f32[1,3], index: 2, kind: output, shape index: {}]  }
   0x1   :  { %8 = vsyncpa [#allocation9], 0 }
   0x2   :  { %9 = vsyncpa [#allocation7], 0  ;;  %s258_s9 = smov [#allocation5]   ;;  %s198_s13 = scalar_lea.hbm %s318_s0, 256 }
   0x3   :  { %s19_s10 = sshll.u32 %s258_s9, 4  ;;  %p199_p0 = scmp.ne.s32.totalorder %s318_s0, %s198_s13  ;;  %s20_s10 = int_to_ptr.vmem [resolvable:$true] %s19_s10 }
   0x4   :  { %p202_p1 = scmp.lt.u32.totalorder %s198_s13, %s318_s0 }
   0x6   :  { %p204_p2 = pnand %p202_p1, %p199_p0 }
   0x8   :  { %207 = shalt.err (!%p204_p2)
}
   0x9   :  { %s208_s18 = scalar_lea.vmem %s20_s10, 256  ;;  %p213_p4 = scmp.lt.s32.totalorder %s20_s10, %s20_s10 }
   0xa   :  { %p209_p3 = scmp.ne.s32.totalorder %s20_s10, %s208_s18  ;;  %p214_p5 = scmp.lt.s32.totalorder %s208_s18, %s208_s18 }
   0xc   :  { %p215_p6 = por %p214_p5, %p213_p4 }
   0xe   :  { %p216_p7 = pnand %p215_p6, %p209_p3 }
  0x10   :  { %219 = shalt.err (!%p216_p7)
}
  0x11   :  { %s259_s19 = smov 128   ;;  %s260_s20 = smov 8  }
  0x12   :  { %25 = dma.hbm_to_vmem [thread:$0]  %s318_s0, 256, %s20_s10, [#allocation6], %s259_s19, %s259_s19, %s260_s20  }
  0x13   :  { %s261_s23 = smov [#allocation8]   ;;  %s220_s27 = scalar_lea.hbm %s319_s1, 256 }
  0x14   :  { %s35_s24 = sshll.u32 %s261_s23, 4  ;;  %p221_p8 = scmp.ne.s32.totalorder %s319_s1, %s220_s27  ;;  %s36_s24 = int_to_ptr.vmem [resolvable:$true] %s35_s24 }
  0x15   :  { %p224_p9 = scmp.lt.u32.totalorder %s220_s27, %s319_s1 }
  0x17   :  { %p226_p10 = pnand %p224_p9, %p221_p8 }
  0x19   :  { %229 = shalt.err (!%p226_p10)
}
  0x1a   :  { %s230_s4 = scalar_lea.vmem %s36_s24, 256  ;;  %p235_p12 = scmp.lt.s32.totalorder %s36_s24, %s36_s24 }
  0x1b   :  { %p231_p11 = scmp.ne.s32.totalorder %s36_s24, %s230_s4  ;;  %p236_p13 = scmp.lt.s32.totalorder %s230_s4, %s230_s4 }
  0x1d   :  { %p237_p0 = por %p236_p13, %p235_p12 }
  0x1f   :  { %p238_p1 = pnand %p237_p0, %p231_p11 }
  0x21   :  { %241 = shalt.err (!%p238_p1)
}
  0x22   :  { %41 = dma.hbm_to_vmem [thread:$0]  %s319_s1, 256, %s36_s24, [#allocation9], %s259_s19, %s259_s19, %s260_s20  }
  0x23   :  { %252 = dma.done.wait [#allocation6], 256  }
  0x24   :  { %253 = vsyncadd [#allocation6], 4294967040 }
  0x25   :  { %254 = dma.done.wait [#allocation9], 256  }
  0x26   :  { %255 = vsyncadd [#allocation9], 4294967040  ;;  %v59_v0 = vld [vmem:[#allocation5] sm:$0xff]  ;;  %v60_v1 = vld [vmem:[#allocation5 + $0x8] sm:$0xff]  ;;  %s242_s10 = scalar_lea.hbm %s320_s2, 16 }
  0x27   :  { %v63_v2 = vand.u32 2147483647, %v59_v0  ;;  %v64_v3 = vand.u32 2147483647, %v60_v1  ;;  %v61_v12 = vld [vmem:[#allocation8] sm:$0xff]  ;;  %v62_v13 = vld [vmem:[#allocation8 + $0x8] sm:$0xff]  ;;  %p243_p2 = scmp.ne.s32.totalorder %s320_s2, %s242_s10  ;;  %p246_p3 = scmp.lt.u32.totalorder %s242_s10, %s320_s2 }
  0x28   :  { %vm83_vm0 = vcmp.ge.f32.partialorder %v59_v0, 0.0  ;;  %vm95_vm1 = vcmp.gt.f32.partialorder %v61_v12, 0.5  ;;  %v87_v14 = vmul.f32 %v61_v12, %v59_v0  ;;  %v89_v15 = vmax.f32 %v59_v0, 0.0 }
  0x29   :  { %v65_v4 = vsub.f32 0.0, %v63_v2  ;;  %v66_v5 = vsub.f32 0.0, %v64_v3  ;;  %vm84_vm2 = vcmp.ge.f32.partialorder %v60_v1, 0.0  ;;  %vm96_vm3 = vcmp.gt.f32.partialorder %v62_v13, 0.5  ;;  %vm97_vm4 = vmxor %vm83_vm0, %vm95_vm1  ;;  %p248_p4 = pnand %p246_p3, %p243_p2 }
  0x2a   :  { %v88_v16 = vmul.f32 %v62_v13, %v60_v1  ;;  %v90_v17 = vmax.f32 %v60_v1, 0.0  ;;  %vm98_vm5 = vmxor %vm84_vm2, %vm96_vm3  ;;  %v91_v21 = vsub.f32 %v89_v15, %v87_v14 }
  0x2b   :  { %v67_v6 = vmul.f32 1.442695, %v65_v4  ;;  %v69_v7 = vmul.f32 1.442695, %v66_v5 }
  0x2c   :  { %v92_v24 = vsub.f32 %v90_v17, %v88_v16 }
  0x2d   :  { %186 = vpow2.f32 %v67_v6 }
  0x2e   :  { %188 = vpow2.f32 %v69_v7 }
  0x37   :  { %v187_v8 = vpop.eup %186 }
  0x38   :  { %v189_v9 = vpop.eup %188  ;;  %v71_v10 = vadd.f32 1.0, %v187_v8 }
  0x39   :  { %v72_v11 = vadd.f32 1.0, %v189_v9 }
  0x3a   :  { %190 = vrcp.f32 %v71_v10 }
  0x3b   :  { %192 = vrcp.f32 %v72_v11 }
  0x3c   :  { %194 = vlog2.f32 %v71_v10 }
  0x3d   :  { %196 = vlog2.f32 %v72_v11 }
  0x44   :  { %v191_v18 = vpop.eup %190 }
  0x45   :  { %v193_v19 = vpop.eup %192  ;;  %v81_v20 = vmul.f32 %v191_v18, %v187_v8 }
  0x46   :  { %v195_v22 = vpop.eup %194  ;;  %v82_v23 = vmul.f32 %v193_v19, %v189_v9 }
  0x47   :  { %v197_v25 = vpop.eup %196  ;;  %v85_v26 = vsel %vm83_vm0, %v191_v18, %v81_v20  ;;  %v74_v27 = vmul.f32 0.6931472, %v195_v22  ;;  %v99_v28 = vsel %vm97_vm4, %v191_v18, %v81_v20 }
  0x48   :  { %v86_v29 = vsel %vm84_vm2, %v193_v19, %v82_v23  ;;  %v107_v30 = vadd.f32 %v85_v26, %v61_v12  ;;  %v76_v31 = vmul.f32 0.6931472, %v197_v25  ;;  %v100_v32 = vsel %vm98_vm5, %v193_v19, %v82_v23 }
  0x49   :  { %v108_v33 = vadd.f32 %v86_v29, %v62_v13  ;;  %v93_v34 = vadd.f32 %v91_v21, %v74_v27  ;;  %v101_v35 = vmul.f32 %v99_v28, %v99_v28  ;;  %v102_v36 = vmul.f32 %v100_v32, %v100_v32 }
  0x4a   :  { %v94_v37 = vadd.f32 %v92_v24, %v76_v31  ;;  %v105_v41 = vmul.f32 %v85_v26, %v61_v12  ;;  %v106_v42 = vmul.f32 %v86_v29, %v62_v13 }
  0x4b   :  { %v118_v38 = vadd.f32 %v108_v33, %v107_v30  ;;  %v103_v39 = vmul.f32 %v101_v35, %v93_v34 }
  0x4c   :  { %v104_v40 = vmul.f32 %v102_v36, %v94_v37  ;;  %v114_v44 = vadd.f32 %v106_v42, %v105_v41 }
  0x4d   :  { %149 = vadd.xlane.f32.xlu1 %v118_v38 }
  0x4e   :  { %v110_v43 = vadd.f32 %v104_v40, %v103_v39 }
  0x50   :  { %125 = vadd.xlane.f32.xlu0 %v110_v43 }
  0x54   :  { %137 = vadd.xlane.f32.xlu0 %v114_v44 }
  0xda   :  { %v150_v45 = vpop.xlane.xlu1 %149 }
  0xdb   :  { %v151_v46 = vrot.slane %v150_v45, 4 }
  0xdd   :  { %v152_v47 = vadd.f32 %v151_v46, %v150_v45  ;;  %v126_v48 = vpop.xlane.xlu0 %125 }
  0xde   :  { %v127_v49 = vrot.slane %v126_v48, 4 }
  0xdf   :  { %v153_v51 = vrot.slane %v152_v47, 2 }
  0xe0   :  { %v128_v50 = vadd.f32 %v127_v49, %v126_v48 }
  0xe1   :  { %v138_v52 = vpop.xlane.xlu0 %137  ;;  %v154_v57 = vadd.f32 %v153_v51, %v152_v47 }
  0xe2   :  { %v129_v53 = vrot.slane %v128_v50, 2  ;;  %v139_v54 = vrot.slane %v138_v52, 4 }
  0xe3   :  { %v155_v62 = vrot.slane %v154_v57, 1 }
  0xe4   :  { %v140_v55 = vadd.f32 %v139_v54, %v138_v52  ;;  %v130_v56 = vadd.f32 %v129_v53, %v128_v50 }
  0xe5   :  { %v156_v1 = vadd.f32 %v155_v62, %v154_v57 }
  0xe6   :  { %v141_v58 = vrot.slane %v140_v55, 2  ;;  %v131_v59 = vrot.slane %v130_v56, 1 }
  0xe8   :  { %v142_v60 = vadd.f32 %v141_v58, %v140_v55  ;;  %v132_v61 = vadd.f32 %v131_v59, %v130_v56 }
  0xea   :  { %175 = vpush %v132_v61  ;;  %v143_v63 = vrot.slane %v142_v60, 1 }
  0xec   :  { %v144_v0 = vadd.f32 %v143_v63, %v142_v60 }
  0xee   :  { %177 = vpush %v144_v0 }
  0xef   :  { %179 = vpush %v156_v1 }
 0x11b   :  { %s176_s1 = spop %175 }
 0x11c   :  { %135 = sst [smem:[#allocation10]] %s176_s1 }
 0x11f   :  { %s178_s6 = spop %177 }
 0x120   :  { %147 = sst [smem:[#allocation10 + $0x1]] %s178_s6  ;;  %s180_s7 = spop %179 }
 0x121   :  { %159 = sst [smem:[#allocation10 + $0x2]] %s180_s7 }
 0x122   :  { %251 = shalt.err (!%p248_p4)
}
 0x123   :  { %s262_s15 = smov [#allocation10]  }
 0x124   :  { %167 = dma.smem_to_hbm %s262_s15, 16, %s320_s2, [#allocation7]  }
 0x125   :  { %256 = dma.done.wait [#allocation7], 16  }
 0x126   :  { %257 = vsyncadd [#allocation7], 4294967280 }
 0x127   :  { %171 = sfence }
 0x128   :  { %172 = vsyncpa [#allocation6], 1 }
 0x129   :  { %173 = vsyncpa [#allocation9], 1 }
 0x12a   :  { %174 = vsyncpa [#allocation7], 1 }

</bundles_post_ra>
